<compile_context>
chip_gen: v7x
topology: tpu7x:2x2x1
jax: 0.10.0
libtpu: 0.0.40
codegen_flags: <defaults>
</compile_context>

<pallas_src>
import functools

import jax
import jax.numpy as jnp
from jax.experimental import pallas as pl
from jax.experimental.pallas import tpu as pltpu

LANES = 128            # lane width (last dim)
MAX_BLOCK_ROWS = 4096  # 4096*128*4B = 2 MiB per f32 input block per grid step


def _dice_partials_kernel(valid_rows_last, valid_lanes_last, need_mask,
                          x_ref, t_ref, out_ref):
    """One grid step: stream one (block_rows, 128) tile of logits + targets and
    emit per-tile partial sums as a (16, 128) f32 slab:
        rows 0:8   -> partial sum of sigmoid(x) * t      (numerator)
        rows 8:16  -> partial sum of sigmoid(x) + t      (denominator)
    No cross-step state, so the grid axis is fully parallel (v7x 2-TC shard).
    """
    i = pl.program_id(0)
    block_rows, lanes = x_ref.shape

    s = jax.nn.sigmoid(x_ref[...].astype(jnp.float32))
    t = t_ref[...].astype(jnp.float32)

    def emit(sv, tv):
        # (block_rows,128)->(block_rows//8,8,128) splits on (8,128) vreg tiles,
        # so the leading-axis sum is a pure VALU vreg add tree (no XLU, no
        # accumulator load/store stream).
        out_ref[0, 0:8, :] = jnp.sum(
            (sv * tv).reshape(block_rows // 8, 8, lanes), axis=0)
        out_ref[0, 8:16, :] = jnp.sum(
            (sv + tv).reshape(block_rows // 8, 8, lanes), axis=0)

    if need_mask:
        last = pl.num_programs(0) - 1

        @pl.when(i < last)
        def _():
            emit(s, t)                       # unmasked fast path

        @pl.when(i == last)
        def _():
            # Only the final tile pays for tail masking.  Bounds are static,
            # tile-relative ints (no global flat index -> no i32 overflow),
            # and neutralize both zero padding and ragged-block garbage.
            ridx = jax.lax.broadcasted_iota(jnp.int32, (block_rows, lanes), 0)
            lidx = jax.lax.broadcasted_iota(jnp.int32, (block_rows, lanes), 1)
            valid = (ridx < valid_rows_last - 1) | (
                (ridx == valid_rows_last - 1) & (lidx < valid_lanes_last))
            emit(jnp.where(valid, s, 0.0), jnp.where(valid, t, 0.0))
    else:
        emit(s, t)


def _sublane_multiple(dtype):
    # Sublanes packed per vreg for this dtype: f32 -> 8, bf16 -> 16, i8/bool -> 32.
    return max(8, 32 // max(1, dtype.itemsize))


def dice_loss(inputs: jax.Array, targets: jax.Array, smooth: float = 1.0) -> jax.Array:
    x = inputs.reshape(-1)
    t = targets.reshape(-1)
    n = x.shape[0]

    rows = pl.cdiv(n, LANES)
    pack = max(_sublane_multiple(x.dtype), _sublane_multiple(t.dtype))

    if rows <= MAX_BLOCK_ROWS:
        # Single tile: block == (padded-to-packing) array rows.
        block_rows = (rows + pack - 1) // pack * pack
        rows_arr = block_rows
    else:
        block_rows = MAX_BLOCK_ROWS        # multiple of 32 (narrow-dtype safe)
        rows_arr = rows                    # ragged last block; masked in-kernel
    num_tiles = pl.cdiv(rows_arr, block_rows)

    # Host-side padding only when the flat size doesn't reshape cleanly
    # (n % 128 != 0, or the tiny single-tile sublane round-up).  The in-kernel
    # mask makes the pad value irrelevant.
    pad = rows_arr * LANES - n
    if pad:
        x = jnp.concatenate([x, jnp.zeros((pad,), x.dtype)])
        t = jnp.concatenate([t, jnp.zeros((pad,), t.dtype)])
    x2 = x.reshape(rows_arr, LANES)
    t2 = t.reshape(rows_arr, LANES)

    # Static tail-mask bounds, relative to the last tile.
    valid_rows_last = rows - (num_tiles - 1) * block_rows
    valid_lanes_last = n - (rows - 1) * LANES
    need_mask = (valid_rows_last < block_rows) or (valid_lanes_last < LANES)

    parts = pl.pallas_call(
        functools.partial(_dice_partials_kernel,
                          valid_rows_last, valid_lanes_last, need_mask),
        out_shape=jax.ShapeDtypeStruct((num_tiles, 16, LANES), jnp.float32),
        grid=(num_tiles,),
        in_specs=[
            pl.BlockSpec((block_rows, LANES), lambda i: (i, 0)),
            pl.BlockSpec((block_rows, LANES), lambda i: (i, 0)),
        ],
        out_specs=pl.BlockSpec((1, 16, LANES), lambda i: (i, 0, 0)),
        compiler_params=pltpu.CompilerParams(
            dimension_semantics=("parallel",)),
    )(x2, t2)

    # Tiny combine (num_tiles * 16 * 128 f32) + dice formula in plain JAX.
    inter = jnp.sum(parts[:, 0:8, :])
    denom = jnp.sum(parts[:, 8:16, :]) + smooth
    return 1.0 - (2.0 * inter + smooth) / denom


if __name__ == "__main__":
    key = jax.random.PRNGKey(0)
    k1, k2 = jax.random.split(key)
    # NCHW, matching a typical segmentation-logits / binary-mask pair.
    x = jax.random.normal(k1, (2, 4, 16, 16), dtype=jnp.float32)
    targets = (jax.random.uniform(k2, (2, 4, 16, 16)) > 0.5).astype(jnp.float32)

    loss = dice_loss(x, targets)
    jax.block_until_ready(loss)

    # Reference check (plain JAX).
    s = jax.nn.sigmoid(x).reshape(-1)
    tt = targets.reshape(-1)
    inter = jnp.sum(s * tt)
    ref = 1.0 - (2.0 * inter + 1.0) / (jnp.sum(s) + jnp.sum(tt) + 1.0)
    assert jnp.allclose(loss, ref, atol=1e-5, rtol=1e-5), (loss, ref)

    print("KERNEL_OK")
</pallas_src>

<mosaic_0001>
module attributes {stable_mosaic.version = 11 : i64} {
  func.func @_dice_partials_kernel(%arg0: i32, %arg1: memref<16x128xf32, #tpu.memory_space<vmem>>, %arg2: memref<16x128xf32, #tpu.memory_space<vmem>>, %arg3: memref<1x16x128xf32, #tpu.memory_space<vmem>>) attributes {dimension_semantics = [#tpu.dimension_semantics<parallel>], iteration_bounds = array<i64: 1>, scalar_prefetch = 0 : i64, scratch_operands = 0 : i64, tpu.core_type = #tpu.core_type<tc>, window_params = [{transform_indices = @transform_0, window_bounds = array<i64: 16, 128>}, {transform_indices = @transform_1, window_bounds = array<i64: 16, 128>}, {transform_indices = @transform_2, window_bounds = array<i64: 1, 16, 128>}]} {
    %c0 = arith.constant 0 : index
    %c0_0 = arith.constant 0 : index
    %0 = vector.load %arg1[%c0, %c0_0] : memref<16x128xf32, #tpu.memory_space<vmem>>, vector<16x128xf32>
    %1 = arith.negf %0 : vector<16x128xf32>
    %2 = math.exp %1 : vector<16x128xf32>
    %cst = arith.constant 1.000000e+00 : f32
    %3 = vector.broadcast %cst : f32 to vector<16x128xf32>
    %4 = arith.addf %3, %2 : vector<16x128xf32>
    %5 = arith.divf %3, %4 : vector<16x128xf32>
    %c0_1 = arith.constant 0 : index
    %c0_2 = arith.constant 0 : index
    %6 = vector.load %arg2[%c0_1, %c0_2] : memref<16x128xf32, #tpu.memory_space<vmem>>, vector<16x128xf32>
    %7 = arith.mulf %5, %6 : vector<16x128xf32>
    %8 = vector.shape_cast %7 : vector<16x128xf32> to vector<2x8x128xf32>
    %cst_3 = arith.constant dense<0.000000e+00> : vector<8x128xf32>
    %9 = vector.multi_reduction <add>, %8, %cst_3 [0] : vector<2x8x128xf32> to vector<8x128xf32>
    %c0_4 = arith.constant 0 : index
    %c0_5 = arith.constant 0 : index
    %c0_6 = arith.constant 0 : index
    %10 = vector.load %arg3[%c0_4, %c0_5, %c0_6] : memref<1x16x128xf32, #tpu.memory_space<vmem>>, vector<1x8x128xf32>
    %11 = vector.shape_cast %10 : vector<1x8x128xf32> to vector<8x128xf32>
    %12 = vector.shape_cast %9 : vector<8x128xf32> to vector<1x8x128xf32>
    tpu.vector_store %arg3[%c0_4, %c0_5, %c0_6], %12 {strides = array<i32>} : memref<1x16x128xf32, #tpu.memory_space<vmem>>, vector<1x8x128xf32>,
    %13 = arith.addf %5, %6 : vector<16x128xf32>
    %14 = vector.shape_cast %13 : vector<16x128xf32> to vector<2x8x128xf32>
    %cst_7 = arith.constant dense<0.000000e+00> : vector<8x128xf32>
    %15 = vector.multi_reduction <add>, %14, %cst_7 [0] : vector<2x8x128xf32> to vector<8x128xf32>
    %c0_8 = arith.constant 0 : index
    %c8 = arith.constant 8 : index
    %c0_9 = arith.constant 0 : index
    %16 = vector.load %arg3[%c0_8, %c8, %c0_9] : memref<1x16x128xf32, #tpu.memory_space<vmem>>, vector<1x8x128xf32>
    %17 = vector.shape_cast %16 : vector<1x8x128xf32> to vector<8x128xf32>
    %18 = vector.shape_cast %15 : vector<8x128xf32> to vector<1x8x128xf32>
    tpu.vector_store %arg3[%c0_8, %c8, %c0_9], %18 {strides = array<i32>} : memref<1x16x128xf32, #tpu.memory_space<vmem>>, vector<1x8x128xf32>,
    return
  }
  func.func @transform_0(%arg0: i32) -> (i32, i32) {
    %c0_i32 = arith.constant 0 : i32
    %c0_i32_0 = arith.constant 0 : i32
    return %arg0, %c0_i32 : i32, i32
  }
  func.func @transform_1(%arg0: i32) -> (i32, i32) {
    %c0_i32 = arith.constant 0 : i32
    %c0_i32_0 = arith.constant 0 : i32
    return %arg0, %c0_i32 : i32, i32
  }
  func.func @transform_2(%arg0: i32) -> (i32, i32, i32) {
    %c0_i32 = arith.constant 0 : i32
    %c0_i32_0 = arith.constant 0 : i32
    %c0_i32_1 = arith.constant 0 : i32
    return %arg0, %c0_i32, %c0_i32_0 : i32, i32, i32
  }
}

</mosaic_0001>

<bundles_post_ra>
// kernel: tpu_custom_call.1
= control target key start
LH: loop header
LB: loop body
LE: loop exit
PB: predicated region body
PF: predicated region fallthrough
CT: control target
= control target key end

     0   :  { %7 = vsyncpa [#allocation3], 0  ;;  %s234_s0 = inlined_call_operand.hbm [shape: f32[16,128], index: 0, kind: input, shape index: {}]   ;;  %s235_s1 = inlined_call_operand.hbm [shape: f32[16,128], index: 1, kind: input, shape index: {}]   ;;  %s236_s2 = inlined_call_operand.hbm [shape: f32[1,16,128], index: 2, kind: output, shape index: {}]  }
   0x1   :  { %8 = vsyncpa [#allocation6], 0 }
   0x2   :  { %9 = vsyncpa [#allocation4], 0  ;;  %s169_s9 = smov [#allocation2]   ;;  %s97_s13 = scalar_lea.hbm %s234_s0, 256 }
   0x3   :  { %s15_s10 = sshll.u32 %s169_s9, 4  ;;  %p98_p0 = scmp.ne.s32.totalorder %s234_s0, %s97_s13  ;;  %s16_s10 = int_to_ptr.vmem [resolvable:$true] %s15_s10 }
   0x4   :  { %p101_p1 = scmp.lt.u32.totalorder %s97_s13, %s234_s0 }
   0x6   :  { %p103_p2 = pnand %p101_p1, %p98_p0 }
   0x8   :  { %106 = shalt.err (!%p103_p2)
}
   0x9   :  { %s107_s18 = scalar_lea.vmem %s16_s10, 256  ;;  %p112_p4 = scmp.lt.s32.totalorder %s16_s10, %s16_s10 }
   0xa   :  { %p108_p3 = scmp.ne.s32.totalorder %s16_s10, %s107_s18  ;;  %p113_p5 = scmp.lt.s32.totalorder %s107_s18, %s107_s18 }
   0xc   :  { %p114_p6 = por %p113_p5, %p112_p4 }
   0xe   :  { %p115_p7 = pnand %p114_p6, %p108_p3 }
  0x10   :  { %118 = shalt.err (!%p115_p7)
}
  0x11   :  { %s170_s19 = smov 128   ;;  %s171_s20 = smov 8  }
  0x12   :  { %21 = dma.hbm_to_vmem [thread:$0]  %s234_s0, 256, %s16_s10, [#allocation3], %s170_s19, %s170_s19, %s171_s20  }
  0x13   :  { %s172_s23 = smov [#allocation5]   ;;  %s119_s27 = scalar_lea.hbm %s235_s1, 256 }
  0x14   :  { %s27_s24 = sshll.u32 %s172_s23, 4  ;;  %p120_p8 = scmp.ne.s32.totalorder %s235_s1, %s119_s27  ;;  %s28_s24 = int_to_ptr.vmem [resolvable:$true] %s27_s24 }
  0x15   :  { %p123_p9 = scmp.lt.u32.totalorder %s119_s27, %s235_s1 }
  0x17   :  { %p125_p10 = pnand %p123_p9, %p120_p8 }
  0x19   :  { %128 = shalt.err (!%p125_p10)
}
  0x1a   :  { %s129_s4 = scalar_lea.vmem %s28_s24, 256  ;;  %p134_p12 = scmp.lt.s32.totalorder %s28_s24, %s28_s24 }
  0x1b   :  { %p130_p11 = scmp.ne.s32.totalorder %s28_s24, %s129_s4  ;;  %p135_p13 = scmp.lt.s32.totalorder %s129_s4, %s129_s4 }
  0x1d   :  { %p136_p0 = por %p135_p13, %p134_p12 }
  0x1f   :  { %p137_p1 = pnand %p136_p0, %p130_p11 }
  0x21   :  { %140 = shalt.err (!%p137_p1)
}
  0x22   :  { %33 = dma.hbm_to_vmem [thread:$0]  %s235_s1, 256, %s28_s24, [#allocation6], %s170_s19, %s170_s19, %s171_s20  }
  0x23   :  { %163 = dma.done.wait [#allocation3], 256  }
  0x24   :  { %164 = vsyncadd [#allocation3], 4294967040 }
  0x25   :  { %165 = dma.done.wait [#allocation6], 256  }
  0x26   :  { %166 = vsyncadd [#allocation6], 4294967040  ;;  %v40_v0 = vld [vmem:[#allocation2] sm:$0xff]  ;;  %v41_v1 = vld [vmem:[#allocation2 + $0x8] sm:$0xff]  ;;  %s173_s1 = smov [#allocation7]  }
  0x27   :  { %v82_v2 = vmul.f32 -1.442695, %v40_v0  ;;  %v83_v3 = vmul.f32 -1.442695, %v41_v1  ;;  %v54_v8 = vld [vmem:[#allocation5] sm:$0xff]  ;;  %v55_v9 = vld [vmem:[#allocation5 + $0x8] sm:$0xff] }
  0x28   :  { %s69_s6 = sshll.u32 %s173_s1, 4  ;;  %s70_s6 = int_to_ptr.vmem [resolvable:$true] %s69_s6 }
  0x29   :  { %89 = vpow2.f32 %v82_v2  ;;  %s141_s7 = scalar_lea.vmem %s70_s6, 256  ;;  %p146_p3 = scmp.lt.s32.totalorder %s70_s6, %s70_s6 }
  0x2a   :  { %91 = vpow2.f32 %v83_v3  ;;  %p142_p2 = scmp.ne.s32.totalorder %s70_s6, %s141_s7  ;;  %p147_p4 = scmp.lt.s32.totalorder %s141_s7, %s141_s7 }
  0x2c   :  { %p148_p5 = por %p147_p4, %p146_p3 }
  0x2e   :  { %p149_p6 = pnand %p148_p5, %p142_p2 }
  0x33   :  { %v90_v4 = vpop.eup %89 }
  0x34   :  { %v92_v5 = vpop.eup %91  ;;  %v48_v6 = vadd.f32 1.0, %v90_v4 }
  0x35   :  { %v49_v7 = vadd.f32 1.0, %v92_v5 }
  0x36   :  { %93 = vrcp.f32 %v48_v6 }
  0x37   :  { %95 = vrcp.f32 %v49_v7 }
  0x40   :  { %v94_v10 = vpop.eup %93 }
  0x41   :  { %v96_v11 = vpop.eup %95  ;;  %v56_v12 = vmul.f32 %v94_v10, %v54_v8  ;;  %v60_v13 = vadd.f32 %v94_v10, %v54_v8 }
  0x42   :  { %v57_v14 = vmul.f32 %v96_v11, %v55_v9  ;;  %v61_v15 = vadd.f32 %v96_v11, %v55_v9 }
  0x44   :  { %v58_v16 = vadd.f32 %v57_v14, %v56_v12  ;;  %v62_v17 = vadd.f32 %v61_v15, %v60_v13 }
  0x46   :  { %59 = vst [vmem:[#allocation7] sm:$0xff] %v58_v16  ;;  %63 = vst [vmem:[#allocation7 + $0x8] sm:$0xff] %v62_v17 }
  0x47   :  { %152 = shalt.err (!%p149_p6)
}
  0x48   :  { %s153_s10 = scalar_lea.hbm %s236_s2, 256 }
  0x49   :  { %p154_p7 = scmp.ne.s32.totalorder %s236_s2, %s153_s10  ;;  %p157_p8 = scmp.lt.u32.totalorder %s153_s10, %s236_s2 }
  0x4b   :  { %p159_p9 = pnand %p157_p8, %p154_p7 }
  0x4d   :  { %162 = shalt.err (!%p159_p9)
}
  0x4e   :  { %75 = dma.vmem_to_hbm [thread:$0]  %s70_s6, 256, %s236_s2, [#allocation4], %s170_s19, %s170_s19, %s171_s20  }
  0x4f   :  { %167 = dma.done.wait [#allocation4], 256  }
  0x50   :  { %168 = vsyncadd [#allocation4], 4294967040 }
  0x51   :  { %79 = vsyncpa [#allocation3], 1 }
  0x52   :  { %80 = vsyncpa [#allocation6], 1 }
  0x53   :  { %81 = vsyncpa [#allocation4], 1 }

</bundles_post_ra>
